<compile_context>
chip_gen: v5e
topology: v5e:2x2
jax: 0.10.0
libtpu: 0.0.40
codegen_flags: <defaults>
</compile_context>

<pallas_src>
import functools

import jax
import jax.numpy as jnp
from jax.experimental import pallas as pl
from jax.experimental.pallas import tpu as pltpu

_INV_SQRT2 = 0.7071067811865476
_BN_EPS = 1e-5


def _gelu_exact(h):
    # PyTorch nn.GELU() default is the exact erf formulation.
    return 0.5 * h * (1.0 + jax.lax.erf(h * _INV_SQRT2))


def _round_up(v, m):
    return ((v + m - 1) // m) * m


def ffnn_kernel(x_ref,
                w1_ref, b1_ref,
                w2_ref, b2_ref,
                w3_ref, b3_ref,
                wds_ref, bds_ref,
                o_ref):
    # x arrives in its native dtype; cast rides a free VPU slot.
    x = x_ref[...].astype(jnp.float32)  # (TB, n_in), unpadded K

    # Block 1..3: folded [Linear + BatchNorm(eval)] + Dropout(eval=id) + exact GELU.
    h = jnp.dot(x, w1_ref[...], preferred_element_type=jnp.float32) + b1_ref[...]
    h = _gelu_exact(h)
    h = jnp.dot(h, w2_ref[...], preferred_element_type=jnp.float32) + b2_ref[...]
    h = _gelu_exact(h)
    h = jnp.dot(h, w3_ref[...], preferred_element_type=jnp.float32) + b3_ref[...]
    h = _gelu_exact(h)

    # 2-class head + Softmax as a pair of sigmoids of the signed logit
    # difference (mathematically identical to softmax over 2 logits, no XLU
    # max/sum reductions over a mostly-masked 2-wide lane axis):
    #   s[:,0] = l1 - l0  ->  p0 = 1/(1+exp(s0))
    #   s[:,1] = l0 - l1  ->  p1 = 1/(1+exp(s1))
    s = jnp.dot(h, wds_ref[...], preferred_element_type=jnp.float32) + bds_ref[...]
    o_ref[...] = 1.0 / (1.0 + jnp.exp(s))  # (TB, 2)


def _pick_batch_tile(B, n_in, block_b):
    """8-aligned batch tile (f32 sublane); >=2 grid steps when B allows so both
    v7x TensorCores get work; capped so 2x double-buffered x tile + a few
    width-128 f32 temporaries per row stay well inside v7x's VMEM (64 MiB
    physical / 32 MiB scoped default).  On v5e/v6e (128 MiB VMEM) this budget
    is simply conservative."""
    two_step = _round_up(max(1, -(-B // 2)), 8)          # ceil(B/2) rounded to 8
    tb = max(8, min(block_b, two_step))
    bytes_per_row = 2 * 4 * n_in + 4 * 4 * 128           # x dbl-buffer + ~4 f32 temps
    cap = max(8, (16 * 1024 * 1024 // bytes_per_row) // 8 * 8)
    return min(tb, cap)


@functools.partial(jax.jit, static_argnames=("block_b",))
def ffnn_forward(x, folded_params, *, block_b=8192):
    (w1t, b1, w2t, b2, w3t, b3, wds, bds) = folded_params
    B, n_in = x.shape

    TB = _pick_batch_tile(B, n_in, block_b)
    grid = (pl.cdiv(B, TB),)  # partial last block handled by Pallas; no pad copies

    weight_args = (w1t, b1, w2t, b2, w3t, b3, wds, bds)

    def const_spec(a):
        return pl.BlockSpec(a.shape, lambda i: (0, 0))

    H1, H2, H3 = w2t.shape[0], w3t.shape[0], wds.shape[0]
    flops = 2 * B * (n_in * H1 + H1 * H2 + H2 * H3 + H3 * 2)
    transcendentals = B * (H1 + H2 + H3 + 2)   # erf x3 layers + exp x2 in head
    bytes_accessed = (int(x.size) * x.dtype.itemsize
                      + 4 * B * 2
                      + 4 * sum(int(a.size) for a in weight_args))

    out = pl.pallas_call(
        ffnn_kernel,
        out_shape=jax.ShapeDtypeStruct((B, 2), jnp.float32),
        grid=grid,
        # x block: (TB, n_in) — last dim equals the full array dim, so no
        # K padding / extra HBM traffic is needed.
        in_specs=[pl.BlockSpec((TB, n_in), lambda i: (i, 0))]
                 + [const_spec(a) for a in weight_args],
        out_specs=pl.BlockSpec((TB, 2), lambda i: (i, 0)),
        compiler_params=pltpu.CompilerParams(
            dimension_semantics=("parallel",),
            vmem_limit_bytes=32 * 1024 * 1024,
        ),
        cost_estimate=pl.CostEstimate(
            flops=flops,
            transcendentals=transcendentals,
            bytes_accessed=bytes_accessed,
        ),
    )(x, *weight_args)

    return out


def make_params(key, n_taxa, layer_sizes=(128, 64, 32)):
    """Raw PyTorch-style parameters (deterministic synthetic).

    hidden[i]: W (out,in), b (out,), gamma/beta/mean/var (out,)  [BatchNorm1d eval]
    head:      W (2,in),  b (2,)
    """
    dims = [n_taxa] + list(layer_sizes)
    hidden = []
    for i in range(len(layer_sizes)):
        fan_in, fan_out = dims[i], dims[i + 1]
        key, kw, kb, kg, kbt, km, kv = jax.random.split(key, 7)
        hidden.append(dict(
            W=jax.random.normal(kw, (fan_out, fan_in), jnp.float32) * 0.1,
            b=jax.random.normal(kb, (fan_out,), jnp.float32) * 0.01,
            gamma=1.0 + 0.1 * jax.random.normal(kg, (fan_out,), jnp.float32),
            beta=0.1 * jax.random.normal(kbt, (fan_out,), jnp.float32),
            mean=0.1 * jax.random.normal(km, (fan_out,), jnp.float32),
            var=jax.random.uniform(kv, (fan_out,), jnp.float32, 0.5, 1.5),
        ))
    key, kw, kb = jax.random.split(key, 3)
    head = dict(
        W=jax.random.normal(kw, (2, layer_sizes[-1]), jnp.float32) * 0.1,
        b=jax.random.normal(kb, (2,), jnp.float32) * 0.01,
    )
    return dict(hidden=hidden, head=head)


def fold_params(raw, eps=_BN_EPS):
    """Fold BN(eval) affine + Linear bias into transposed weights:
       BN(Wx + b) = (scale*W) x + scale*(b - mean) + beta,  scale = gamma/sqrt(var+eps).
    The 2-class head is folded into signed logit-difference form so the kernel's
    softmax is two sigmoids:
       wds[:,0] = W1 - W0, bds[0,0] = b1 - b0   (gives l1 - l0 -> p0)
       wds[:,1] = W0 - W1, bds[0,1] = b0 - b1   (gives l0 - l1 -> p1)
    Returns (w1t, b1, w2t, b2, w3t, b3, wds, bds), hidden weights as (in, out)."""
    folded = []
    for layer in raw["hidden"]:
        scale = layer["gamma"] / jnp.sqrt(layer["var"] + eps)          # (out,)
        wt = (layer["W"] * scale[:, None]).T                           # (in, out)
        bf = (layer["b"] - layer["mean"]) * scale + layer["beta"]      # (out,)
        folded += [wt, bf.reshape(1, -1)]
    w4t = raw["head"]["W"].T                                           # (in, 2)
    b4 = raw["head"]["b"].reshape(1, 2)
    wdiff = w4t[:, 0:1] - w4t[:, 1:2]                                  # (in, 1) = W0 - W1
    bdiff = b4[:, 0:1] - b4[:, 1:2]                                    # (1, 1)  = b0 - b1
    wds = jnp.concatenate([-wdiff, wdiff], axis=1)                     # (in, 2)
    bds = jnp.concatenate([-bdiff, bdiff], axis=1)                     # (1, 2)
    folded += [wds, bds]
    return tuple(folded)


def ffnn_reference(x, raw, eps=_BN_EPS):
    """Pure-JAX reference with un-folded PyTorch-style math (eval mode)."""
    h = x.astype(jnp.float32)
    for layer in raw["hidden"]:
        h = h @ layer["W"].T + layer["b"]
        h = (h - layer["mean"]) / jnp.sqrt(layer["var"] + eps) * layer["gamma"] + layer["beta"]
        h = _gelu_exact(h)
    logits = h @ raw["head"]["W"].T + raw["head"]["b"]
    return jax.nn.softmax(logits, axis=-1)


if __name__ == "__main__":
    key = jax.random.PRNGKey(0)
    B, N_TAXA = 20, 37  # odd feature width (no K padding) + partial batch tiles

    kx, kp = jax.random.split(key)
    x = jax.random.normal(kx, (B, N_TAXA), jnp.float32)
    raw = make_params(kp, N_TAXA)
    folded = fold_params(raw)

    ref = ffnn_reference(x, raw)

    # Multi-step grid path (TB=8 -> grid=(3,), last block partial & masked).
    out = jax.block_until_ready(ffnn_forward(x, folded, block_b=8))
    assert out.shape == (B, 2)
    assert jnp.allclose(out, ref, atol=1e-5, rtol=1e-5), "mismatch vs JAX reference (tiled)"
    assert jnp.allclose(jnp.sum(out, axis=-1), 1.0, atol=1e-5), "softmax rows must sum to 1"

    # Default tile path (TB=16 -> grid=(2,), both v7x TensorCores busy, partial last block).
    out2 = jax.block_until_ready(ffnn_forward(x, folded))
    assert jnp.allclose(out2, ref, atol=1e-5, rtol=1e-5), "mismatch vs JAX reference (default)"

    print("KERNEL_OK")
</pallas_src>

<mosaic_0001>
module attributes {stable_mosaic.version = 11 : i64} {
  func.func @ffnn_kernel(%arg0: i32, %arg1: memref<8x37xf32, #tpu.memory_space<vmem>>, %arg2: memref<37x128xf32, #tpu.memory_space<vmem>>, %arg3: memref<1x128xf32, #tpu.memory_space<vmem>>, %arg4: memref<128x64xf32, #tpu.memory_space<vmem>>, %arg5: memref<1x64xf32, #tpu.memory_space<vmem>>, %arg6: memref<64x32xf32, #tpu.memory_space<vmem>>, %arg7: memref<1x32xf32, #tpu.memory_space<vmem>>, %arg8: memref<32x2xf32, #tpu.memory_space<vmem>>, %arg9: memref<1x2xf32, #tpu.memory_space<vmem>>, %arg10: memref<8x2xf32, #tpu.memory_space<vmem>>) attributes {dimension_semantics = [#tpu.dimension_semantics<parallel>], iteration_bounds = array<i64: 3>, scalar_prefetch = 0 : i64, scratch_operands = 0 : i64, tpu.core_type = #tpu.core_type<tc>, window_params = [{transform_indices = @transform_0, window_bounds = array<i64: 8, 37>}, {pipeline_mode = #tpu.pipeline_mode<synchronous>, transform_indices = @transform_1, window_bounds = array<i64: 37, 128>}, {pipeline_mode = #tpu.pipeline_mode<synchronous>, transform_indices = @transform_2, window_bounds = array<i64: 1, 128>}, {pipeline_mode = #tpu.pipeline_mode<synchronous>, transform_indices = @transform_3, window_bounds = array<i64: 128, 64>}, {pipeline_mode = #tpu.pipeline_mode<synchronous>, transform_indices = @transform_4, window_bounds = array<i64: 1, 64>}, {pipeline_mode = #tpu.pipeline_mode<synchronous>, transform_indices = @transform_5, window_bounds = array<i64: 64, 32>}, {pipeline_mode = #tpu.pipeline_mode<synchronous>, transform_indices = @transform_6, window_bounds = array<i64: 1, 32>}, {pipeline_mode = #tpu.pipeline_mode<synchronous>, transform_indices = @transform_7, window_bounds = array<i64: 32, 2>}, {pipeline_mode = #tpu.pipeline_mode<synchronous>, transform_indices = @transform_8, window_bounds = array<i64: 1, 2>}, {transform_indices = @transform_9, window_bounds = array<i64: 8, 2>}]} {
    %c0 = arith.constant 0 : index
    %c0_0 = arith.constant 0 : index
    %0 = vector.load %arg1[%c0, %c0_0] : memref<8x37xf32, #tpu.memory_space<vmem>>, vector<8x37xf32>
    %c0_1 = arith.constant 0 : index
    %c0_2 = arith.constant 0 : index
    %1 = vector.load %arg2[%c0_1, %c0_2] : memref<37x128xf32, #tpu.memory_space<vmem>>, vector<37x128xf32>
    %cst = arith.constant dense<0.000000e+00> : vector<8x128xf32>
    %2 = tpu.matmul %0, %1, %cst {dimension_numbers = #tpu.dot_dimension_numbers<[1], [0], [0], [1], [0, 0, 1, 1], [], []>} : vector<8x37xf32>, vector<37x128xf32>, vector<8x128xf32> -> vector<8x128xf32>
    %c0_3 = arith.constant 0 : index
    %c0_4 = arith.constant 0 : index
    %3 = vector.load %arg3[%c0_3, %c0_4] : memref<1x128xf32, #tpu.memory_space<vmem>>, vector<1x128xf32>
    %4 = vector.broadcast %3 : vector<1x128xf32> to vector<8x128xf32>
    %5 = arith.addf %2, %4 : vector<8x128xf32>
    %cst_5 = arith.constant 5.000000e-01 : f32
    %6 = vector.broadcast %cst_5 : f32 to vector<8x128xf32>
    %7 = arith.mulf %6, %5 : vector<8x128xf32>
    %cst_6 = arith.constant 0.707106769 : f32
    %8 = vector.broadcast %cst_6 : f32 to vector<8x128xf32>
    %9 = arith.mulf %5, %8 : vector<8x128xf32>
    %10 = math.erf %9 : vector<8x128xf32>
    %cst_7 = arith.constant 1.000000e+00 : f32
    %11 = vector.broadcast %cst_7 : f32 to vector<8x128xf32>
    %12 = arith.addf %11, %10 : vector<8x128xf32>
    %13 = arith.mulf %7, %12 : vector<8x128xf32>
    %c0_8 = arith.constant 0 : index
    %c0_9 = arith.constant 0 : index
    %14 = vector.load %arg4[%c0_8, %c0_9] : memref<128x64xf32, #tpu.memory_space<vmem>>, vector<128x64xf32>
    %cst_10 = arith.constant dense<0.000000e+00> : vector<8x64xf32>
    %15 = tpu.matmul %13, %14, %cst_10 {dimension_numbers = #tpu.dot_dimension_numbers<[1], [0], [0], [1], [0, 0, 1, 1], [], []>} : vector<8x128xf32>, vector<128x64xf32>, vector<8x64xf32> -> vector<8x64xf32>
    %c0_11 = arith.constant 0 : index
    %c0_12 = arith.constant 0 : index
    %16 = vector.load %arg5[%c0_11, %c0_12] : memref<1x64xf32, #tpu.memory_space<vmem>>, vector<1x64xf32>
    %17 = vector.broadcast %16 : vector<1x64xf32> to vector<8x64xf32>
    %18 = arith.addf %15, %17 : vector<8x64xf32>
    %cst_13 = arith.constant 5.000000e-01 : f32
    %19 = vector.broadcast %cst_13 : f32 to vector<8x64xf32>
    %20 = arith.mulf %19, %18 : vector<8x64xf32>
    %cst_14 = arith.constant 0.707106769 : f32
    %21 = vector.broadcast %cst_14 : f32 to vector<8x64xf32>
    %22 = arith.mulf %18, %21 : vector<8x64xf32>
    %23 = math.erf %22 : vector<8x64xf32>
    %cst_15 = arith.constant 1.000000e+00 : f32
    %24 = vector.broadcast %cst_15 : f32 to vector<8x64xf32>
    %25 = arith.addf %24, %23 : vector<8x64xf32>
    %26 = arith.mulf %20, %25 : vector<8x64xf32>
    %c0_16 = arith.constant 0 : index
    %c0_17 = arith.constant 0 : index
    %27 = vector.load %arg6[%c0_16, %c0_17] : memref<64x32xf32, #tpu.memory_space<vmem>>, vector<64x32xf32>
    %cst_18 = arith.constant dense<0.000000e+00> : vector<8x32xf32>
    %28 = tpu.matmul %26, %27, %cst_18 {dimension_numbers = #tpu.dot_dimension_numbers<[1], [0], [0], [1], [0, 0, 1, 1], [], []>} : vector<8x64xf32>, vector<64x32xf32>, vector<8x32xf32> -> vector<8x32xf32>
    %c0_19 = arith.constant 0 : index
    %c0_20 = arith.constant 0 : index
    %29 = vector.load %arg7[%c0_19, %c0_20] : memref<1x32xf32, #tpu.memory_space<vmem>>, vector<1x32xf32>
    %30 = vector.broadcast %29 : vector<1x32xf32> to vector<8x32xf32>
    %31 = arith.addf %28, %30 : vector<8x32xf32>
    %cst_21 = arith.constant 5.000000e-01 : f32
    %32 = vector.broadcast %cst_21 : f32 to vector<8x32xf32>
    %33 = arith.mulf %32, %31 : vector<8x32xf32>
    %cst_22 = arith.constant 0.707106769 : f32
    %34 = vector.broadcast %cst_22 : f32 to vector<8x32xf32>
    %35 = arith.mulf %31, %34 : vector<8x32xf32>
    %36 = math.erf %35 : vector<8x32xf32>
    %cst_23 = arith.constant 1.000000e+00 : f32
    %37 = vector.broadcast %cst_23 : f32 to vector<8x32xf32>
    %38 = arith.addf %37, %36 : vector<8x32xf32>
    %39 = arith.mulf %33, %38 : vector<8x32xf32>
    %c0_24 = arith.constant 0 : index
    %c0_25 = arith.constant 0 : index
    %40 = vector.load %arg8[%c0_24, %c0_25] : memref<32x2xf32, #tpu.memory_space<vmem>>, vector<32x2xf32>
    %cst_26 = arith.constant dense<0.000000e+00> : vector<8x2xf32>
    %41 = tpu.matmul %39, %40, %cst_26 {dimension_numbers = #tpu.dot_dimension_numbers<[1], [0], [0], [1], [0, 0, 1, 1], [], []>} : vector<8x32xf32>, vector<32x2xf32>, vector<8x2xf32> -> vector<8x2xf32>
    %c0_27 = arith.constant 0 : index
    %c0_28 = arith.constant 0 : index
    %42 = vector.load %arg9[%c0_27, %c0_28] : memref<1x2xf32, #tpu.memory_space<vmem>>, vector<1x2xf32>
    %43 = vector.broadcast %42 : vector<1x2xf32> to vector<8x2xf32>
    %44 = arith.addf %41, %43 : vector<8x2xf32>
    %45 = math.exp %44 : vector<8x2xf32>
    %cst_29 = arith.constant 1.000000e+00 : f32
    %46 = vector.broadcast %cst_29 : f32 to vector<8x2xf32>
    %47 = arith.addf %46, %45 : vector<8x2xf32>
    %cst_30 = arith.constant 1.000000e+00 : f32
    %48 = vector.broadcast %cst_30 : f32 to vector<8x2xf32>
    %49 = arith.divf %48, %47 : vector<8x2xf32>
    %c0_31 = arith.constant 0 : index
    %c0_32 = arith.constant 0 : index
    %50 = vector.load %arg10[%c0_31, %c0_32] : memref<8x2xf32, #tpu.memory_space<vmem>>, vector<8x2xf32>
    tpu.vector_store %arg10[%c0_31, %c0_32], %49 {strides = array<i32>} : memref<8x2xf32, #tpu.memory_space<vmem>>, vector<8x2xf32>,
    return
  }
  func.func @transform_0(%arg0: i32) -> (i32, i32) {
    %c0_i32 = arith.constant 0 : i32
    %c0_i32_0 = arith.constant 0 : i32
    return %arg0, %c0_i32 : i32, i32
  }
  func.func @transform_1(%arg0: i32) -> (i32, i32) {
    %c0_i32 = arith.constant 0 : i32
    %c0_i32_0 = arith.constant 0 : i32
    %c0_i32_1 = arith.constant 0 : i32
    return %c0_i32, %c0_i32_0 : i32, i32
  }
  func.func @transform_2(%arg0: i32) -> (i32, i32) {
    %c0_i32 = arith.constant 0 : i32
    %c0_i32_0 = arith.constant 0 : i32
    %c0_i32_1 = arith.constant 0 : i32
    return %c0_i32, %c0_i32_0 : i32, i32
  }
  func.func @transform_3(%arg0: i32) -> (i32, i32) {
    %c0_i32 = arith.constant 0 : i32
    %c0_i32_0 = arith.constant 0 : i32
    %c0_i32_1 = arith.constant 0 : i32
    return %c0_i32, %c0_i32_0 : i32, i32
  }
  func.func @transform_4(%arg0: i32) -> (i32, i32) {
    %c0_i32 = arith.constant 0 : i32
    %c0_i32_0 = arith.constant 0 : i32
    %c0_i32_1 = arith.constant 0 : i32
    return %c0_i32, %c0_i32_0 : i32, i32
  }
  func.func @transform_5(%arg0: i32) -> (i32, i32) {
    %c0_i32 = arith.constant 0 : i32
    %c0_i32_0 = arith.constant 0 : i32
    %c0_i32_1 = arith.constant 0 : i32
    return %c0_i32, %c0_i32_0 : i32, i32
  }
  func.func @transform_6(%arg0: i32) -> (i32, i32) {
    %c0_i32 = arith.constant 0 : i32
    %c0_i32_0 = arith.constant 0 : i32
    %c0_i32_1 = arith.constant 0 : i32
    return %c0_i32, %c0_i32_0 : i32, i32
  }
  func.func @transform_7(%arg0: i32) -> (i32, i32) {
    %c0_i32 = arith.constant 0 : i32
    %c0_i32_0 = arith.constant 0 : i32
    %c0_i32_1 = arith.constant 0 : i32
    return %c0_i32, %c0_i32_0 : i32, i32
  }
  func.func @transform_8(%arg0: i32) -> (i32, i32) {
    %c0_i32 = arith.constant 0 : i32
    %c0_i32_0 = arith.constant 0 : i32
    %c0_i32_1 = arith.constant 0 : i32
    return %c0_i32, %c0_i32_0 : i32, i32
  }
  func.func @transform_9(%arg0: i32) -> (i32, i32) {
    %c0_i32 = arith.constant 0 : i32
    %c0_i32_0 = arith.constant 0 : i32
    return %arg0, %c0_i32 : i32, i32
  }
}

</mosaic_0001>

<bundles_post_ra>
// kernel: ffnn_forward.1
= control target key start
LH: loop header
LB: loop body
LE: loop exit
PB: predicated region body
PF: predicated region fallthrough
CT: control target
= control target key end

     0   :  { %s775_s30 = smov 0   ;;  %s910_s0 = inlined_call_operand.vmem [shape: f32[20,37], index: 0, kind: input, shape index: {}]   ;;  %s911_s1 = inlined_call_operand.vmem [shape: f32[37,128], index: 1, kind: input, shape index: {}]   ;;  %s912_s2 = inlined_call_operand.vmem [shape: f32[1,128], index: 2, kind: input, shape index: {}]   ;;  %s913_s3 = inlined_call_operand.vmem [shape: f32[128,64], index: 3, kind: input, shape index: {}]   ;;  %s914_s4 = inlined_call_operand.vmem [shape: f32[1,64], index: 4, kind: input, shape index: {}]   ;;  %s915_s5 = inlined_call_operand.vmem [shape: f32[64,32], index: 5, kind: input, shape index: {}]   ;;  %s916_s6 = inlined_call_operand.vmem [shape: f32[1,32], index: 6, kind: input, shape index: {}]   ;;  %s917_s7 = inlined_call_operand.vmem [shape: f32[32,2], index: 7, kind: input, shape index: {}]   ;;  %s918_s8 = inlined_call_operand.vmem [shape: f32[1,2], index: 8, kind: input, shape index: {}]   ;;  %s919_s9 = inlined_call_operand.vmem [shape: f32[20,2], index: 9, kind: output, shape index: {}]  }
   0x1 LB: > { %s679_s10 = sadd.s32 4294967295, %s723_s30   ;;  %p683_p0 = scmp.ge.s32.totalorder %s723_s30, 1  ;;  %s723_s30 = sphi %s775_s30, %s19_s30  }
   0x2   : > { %p286_p1 = scmp.lt.s32.totalorder %s723_s30, 4 }
   0x4   : > { %p287_p2 = pnand %p683_p0, %p286_p1 }
   0x5   : > { %p320_p3 = scmp.lt.s32.totalorder (!%p287_p2), %s679_s10, 2 }
   0x6   : > { %290 = sbr.rel (%p287_p2) target bundleno = 727 (0x2d7), region = 56 }
   0xb   : > { %v333_v0 = vld [vmem:[%s911_s1 + $0x20] sm:$0x1f]  ;;  %vm342_vm0 = vcmask 1044480   ;;  %v332_v1 = vld [vmem:[%s911_s1 + $0x18] sm:$0xff]  ;;  %v331_v2 = vld [vmem:[%s911_s1 + $0x10] sm:$0xff]  ;;  %s921_s10 = smov (!%p320_p3, %s679_s10), 2 }
   0xc   : > { %686 = vmatpush.msk.msra.mxu0 %vm342_vm0, %v333_v0  ;;  %v330_v3 = vld [vmem:[%s911_s1 + $0x8] sm:$0xff]  ;;  %s684_s19 = sshll.u32 %s921_s10, 3  ;;  %v329_v4 = vld [vmem:[%s911_s1] sm:$0xff]  ;;  %vm338_vm1 = vcmask 302080   ;;  %v425_v6 = vld [vmem:[%s913_s3 + $0x78] sm:$0xff]  ;;  %vm506_vm10 = vcmask 523264  }
   0xd   : > { %s323_s22 = scalar_lea.vmem %s910_s0, %s684_s19  ;;  %430 = vmatpush.msra.mxu1 %v425_v6  ;;  %v424_v7 = vld [vmem:[%s913_s3 + $0x70] sm:$0xff]  ;;  %v423_v8 = vld [vmem:[%s913_s3 + $0x68] sm:$0xff]  ;;  %v422_v9 = vld [vmem:[%s913_s3 + $0x60] sm:$0xff]  ;;  %vm582_vm15 = vcmask 261120   ;;  %s327_s18 = scalar_lea.vmem %s919_s9, %s684_s19 }
   0xe   : > { %358 = vmatpush.msra.mxu0 %v332_v1  ;;  %v328_v5 = vld [vmem:[%s323_s22] sm:$0xff]  ;;  %v421_v11 = vld [vmem:[%s913_s3 + $0x58] sm:$0xff]  ;;  %v420_v12 = vld [vmem:[%s913_s3 + $0x50] sm:$0xff] }
   0xf   : > { %431 = vmatpush.msra.mxu1 %v424_v7  ;;  %v703_v10 = vld [vmem:[%s912_s2] ss:$0 sm:$0xff]  ;;  %v419_v14 = vld [vmem:[%s913_s3 + $0x48] sm:$0xff]  ;;  %v417_v18 = vld [vmem:[%s913_s3 + $0x38] sm:$0xff] }
  0x10   : > { %359 = vmatpush.msra.mxu0 %v331_v2  ;;  %v418_v16 = vld [vmem:[%s913_s3 + $0x40] sm:$0xff]  ;;  %v416_v20 = vld [vmem:[%s913_s3 + $0x30] sm:$0xff]  ;;  %v415_v22 = vld [vmem:[%s913_s3 + $0x28] sm:$0xff] }
  0x11   : > { %432 = vmatpush.msra.mxu1 %v423_v8  ;;  %v414_v25 = vld [vmem:[%s913_s3 + $0x20] sm:$0xff]  ;;  %v413_v28 = vld [vmem:[%s913_s3 + $0x18] sm:$0xff]  ;;  %v412_v31 = vld [vmem:[%s913_s3 + $0x10] sm:$0xff] }
  0x12   : > { %360 = vmatpush.msra.mxu0 %v330_v3  ;;  %v411_v34 = vld [vmem:[%s913_s3 + $0x8] sm:$0xff]  ;;  %v410_v36 = vld [vmem:[%s913_s3] sm:$0xff]  ;;  %v501_v6 = vld [vmem:[%s915_s5 + $0x38] sm:$0xff] }
  0x13   : > { %433 = vmatpush.msra.mxu1 %v422_v9  ;;  %v704_v0 = vld [vmem:[%s914_s4] ss:$0 sm:$0xff]  ;;  %518 = vmatpush.msra.mxu2 %v501_v6  ;;  %v500_v9 = vld [vmem:[%s915_s5 + $0x30] sm:$0xff] }
  0x14   : > { %361 = vmatpush.msra.mxu0 %v329_v4 }
  0x15   : > { %687 = vmatmul.msk.f32.vlgmr.msra.gmra.mxu0 %vm338_vm1, %v328_v5  ;;  %434 = vmatpush.msra.mxu1 %v421_v11 }
  0x16   : > { %519 = vmatpush.msra.mxu2 %v500_v9 }
  0x17   : > { %435 = vmatpush.msra.mxu1 %v420_v12  ;;  %v499_v12 = vld [vmem:[%s915_s5 + $0x28] sm:$0xff] }
  0x18   : > { %520 = vmatpush.msra.mxu2 %v499_v12 }
  0x19   : > { %436 = vmatpush.msra.mxu1 %v419_v14 }
  0x1b   : > { %437 = vmatpush.msra.mxu1 %v418_v16  ;;  %v497_v16 = vld [vmem:[%s915_s5 + $0x18] sm:$0xff] }
  0x1d   : > { %438 = vmatpush.msra.mxu1 %v417_v18  ;;  %v496_v18 = vld [vmem:[%s915_s5 + $0x10] sm:$0xff] }
  0x1f   : > { %439 = vmatpush.msra.mxu1 %v416_v20 }
  0x21   : > { %440 = vmatpush.msra.mxu1 %v415_v22 }
  0x23   : > { %441 = vmatpush.msra.mxu1 %v414_v25 }
  0x25   : > { %442 = vmatpush.msra.mxu1 %v413_v28 }
  0x27   : > { %443 = vmatpush.msra.mxu1 %v412_v31 }
  0x29   : > { %444 = vmatpush.msra.mxu1 %v411_v34 }
  0x2b   : > { %445 = vmatpush.msra.mxu1 %v410_v36 }
  0x92   : > { %v363_v13 = vpop.f32.mrf.mxu0 }
  0x93   : > { %v364_v15 = vadd.f32 %v703_v10, %v363_v13 }
  0x95   : > { %v367_v17 = vmul.f32 0.70710677, %v364_v15  ;;  %v366_v61 = vmul.f32 0.5, %v364_v15  ;;  %v498_v15 = vld [vmem:[%s915_s5 + $0x20] sm:$0xff] }
  0x96   : > { %521 = vmatpush.msra.mxu2 %v498_v15 }
  0x97   : > { %v368_v19 = vmul.f32 %v367_v17, %v367_v17 }
  0x98   : > { %522 = vmatpush.msra.mxu2 %v497_v16 }
  0x99   : > { %v369_v21 = vmin.f32 %v368_v19, 16.0 }
  0x9a   : > { %523 = vmatpush.msra.mxu2 %v496_v18 }
  0x9b   : > { %v370_v23 = vmul.f32 2.1237322e-06, %v369_v21  ;;  %v381_v24 = vmul.f32 3.8918573e-05, %v369_v21 }
  0x9d   : > { %v371_v26 = vadd.f32 0.00028619796, %v370_v23  ;;  %v382_v27 = vadd.f32 0.001143296, %v381_v24  ;;  %v494_v23 = vld [vmem:[%s915_s5] sm:$0xff] }
  0x9f   : > { %v372_v29 = vmul.f32 %v371_v26, %v369_v21  ;;  %v383_v30 = vmul.f32 %v382_v27, %v369_v21 }
  0xa1   : > { %v384_v32 = vadd.f32 0.014752088, %v383_v30  ;;  %v373_v33 = vadd.f32 0.0036580483, %v372_v29 }
  0xa3   : > { %v385_v35 = vmul.f32 %v384_v32, %v369_v21  ;;  %v374_v38 = vmul.f32 %v373_v33, %v369_v21 }
  0xa5   : > { %v386_v37 = vadd.f32 0.112945676, %v385_v35  ;;  %v375_v41 = vadd.f32 0.05243302, %v374_v38 }
  0xa7   : > { %v387_v39 = vmul.f32 %v386_v37, %v369_v21  ;;  %v376_v44 = vmul.f32 %v375_v41, %v369_v21 }
  0xa9   : > { %v388_v40 = vadd.f32 0.4994258, %v387_v39  ;;  %v377_v45 = vadd.f32 0.18741608, %v376_v44 }
  0xab   : > { %v389_v42 = vmul.f32 %v388_v40, %v369_v21  ;;  %v378_v47 = vmul.f32 %v377_v45, %v369_v21  ;;  %v495_v21 = vld [vmem:[%s915_s5 + $0x8] sm:$0xff] }
  0xac   : > { %524 = vmatpush.msra.mxu2 %v495_v21 }
  0xad   : > { %v390_v43 = vadd.f32 1.0, %v389_v42  ;;  %v379_v51 = vadd.f32 1.1283791, %v378_v47 }
  0xae   : > { %525 = vmatpush.msra.mxu2 %v494_v23 }
  0xaf   : > { %707 = vrcp.f32 %v390_v43  ;;  %v402_v50 = vand.u32 2147483648, %v390_v43  ;;  %v400_v53 = vand.u32 2147483647, %v390_v43  ;;  %vm396_vm3 = vweird.f32 %v390_v43 }
  0xb0   : > { %v380_v56 = vmul.f32 %v379_v51, %v367_v17 }
  0xb1   : > { %v403_v55 = vor.u32 1.1754944e-38, %v402_v50  ;;  %vm401_vm5 = vcmp.eq.f32.partialorder %v400_v53, 8.507059e+37  ;;  %v705_v50 = vld [vmem:[%s916_s6] ss:$0 sm:$0xff] }
  0xb5   : > { %v708_v46 = vpop.eup %707 }
  0xb6   : > { %v392_v48 = vmul.f32 %v708_v46, %v390_v43  ;;  %vm397_vm2 = vweird.f32 %v708_v46 }
  0xb7   : > { %vm398_vm4 = vmor %vm396_vm3, %vm397_vm2  ;;  %vm624_vm3 = vcmask 15360  }
  0xb8   : > { %v393_v49 = vsub.f32 1.0, %v392_v48 }
  0xba   : > { %v394_v52 = vmul.f32 %v708_v46, %v393_v49 }
  0xbc   : > { %v395_v54 = vadd.f32 %v708_v46, %v394_v52 }
  0xbe   : > { %v399_v57 = vsel %vm398_vm4, %v708_v46, %v395_v54 }
  0xbf   : > { %v404_v58 = vsel %vm401_vm5, %v403_v55, %v399_v57 }
  0xc0   : > { %v405_v59 = vmul.f32 %v404_v58, %v380_v56 }
  0xc2   : > { %v688_v60 = vclamps-f32 %v405_v59, 1.0 }
  0xc4   : > { %v408_v62 = vadd.f32 1.0, %v688_v60 }
  0xc6   : > { %v409_v63 = vmul.f32 %v408_v62, %v366_v61  ;;  %v577_v62 = vld [vmem:[%s917_s7 + $0x18] sm:$0xff] }
  0xc7   : > { %598 = vmatpush.msra.mxu3 %v577_v62 }
  0xc8   : > { %446 = vmatmul.f32.vlgmr.msra.gmra.mxu1 %v409_v63  ;;  %v576_v63 = vld [vmem:[%s917_s7 + $0x10] sm:$0xff] }
  0xc9   : > { %599 = vmatpush.msra.mxu3 %v576_v63 }
 0x145   : > { %v447_v1 = vpop.f32.mrf.mxu1 }
 0x146   : > { %v448_v2 = vadd.f32 %v704_v0, %v447_v1 }
 0x148   : > { %v451_v3 = vmul.f32 0.70710677, %v448_v2  ;;  %v450_v47 = vmul.f32 0.5, %v448_v2  ;;  %v575_v2 = vld [vmem:[%s917_s7 + $0x8] sm:$0xff] }
 0x149   : > { %600 = vmatpush.msra.mxu3 %v575_v2 }
 0x14a   : > { %v452_v4 = vmul.f32 %v451_v3, %v451_v3 }
 0x14c   : > { %v453_v5 = vmin.f32 %v452_v4, 16.0  ;;  %v574_v4 = vld [vmem:[%s917_s7] sm:$0xff] }
 0x14d   : > { %601 = vmatpush.msra.mxu3 %v574_v4 }
 0x14e   : > { %v454_v7 = vmul.f32 2.1237322e-06, %v453_v5  ;;  %v465_v8 = vmul.f32 3.8918573e-05, %v453_v5 }
 0x150   : > { %v455_v10 = vadd.f32 0.00028619796, %v454_v7  ;;  %v466_v11 = vadd.f32 0.001143296, %v465_v8 }
 0x152   : > { %v456_v13 = vmul.f32 %v455_v10, %v453_v5  ;;  %v467_v14 = vmul.f32 %v466_v11, %v453_v5 }
 0x154   : > { %v468_v17 = vadd.f32 0.014752088, %v467_v14  ;;  %v457_v19 = vadd.f32 0.0036580483, %v456_v13 }
 0x156   : > { %v469_v20 = vmul.f32 %v468_v17, %v453_v5  ;;  %v458_v24 = vmul.f32 %v457_v19, %v453_v5 }
 0x158   : > { %v470_v22 = vadd.f32 0.112945676, %v469_v20  ;;  %v459_v27 = vadd.f32 0.05243302, %v458_v24 }
 0x15a   : > { %v471_v25 = vmul.f32 %v470_v22, %v453_v5  ;;  %v460_v30 = vmul.f32 %v459_v27, %v453_v5 }
 0x15c   : > { %v472_v26 = vadd.f32 0.4994258, %v471_v25  ;;  %v461_v31 = vadd.f32 0.18741608, %v460_v30 }
 0x15e   : > { %v473_v28 = vmul.f32 %v472_v26, %v453_v5  ;;  %v462_v33 = vmul.f32 %v461_v31, %v453_v5 }
 0x160   : > { %v474_v29 = vadd.f32 1.0, %v473_v28  ;;  %v463_v37 = vadd.f32 1.1283791, %v462_v33 }
 0x162   : > { %709 = vrcp.f32 %v474_v29  ;;  %v486_v36 = vand.u32 2147483648, %v474_v29  ;;  %v484_v39 = vand.u32 2147483647, %v474_v29  ;;  %vm480_vm7 = vweird.f32 %v474_v29 }
 0x163   : > { %v464_v42 = vmul.f32 %v463_v37, %v451_v3 }
 0x164   : > { %v487_v41 = vor.u32 1.1754944e-38, %v486_v36  ;;  %vm485_vm9 = vcmp.eq.f32.partialorder %v484_v39, 8.507059e+37 }
 0x168   : > { %v710_v32 = vpop.eup %709 }
 0x169   : > { %v476_v34 = vmul.f32 %v710_v32, %v474_v29  ;;  %vm481_vm6 = vweird.f32 %v710_v32 }
 0x16a   : > { %vm482_vm8 = vmor %vm480_vm7, %vm481_vm6 }
 0x16b   : > { %v477_v35 = vsub.f32 1.0, %v476_v34 }
 0x16d   : > { %v478_v38 = vmul.f32 %v710_v32, %v477_v35 }
 0x16f   : > { %v479_v40 = vadd.f32 %v710_v32, %v478_v38 }
 0x171   : > { %v483_v43 = vsel %vm482_vm8, %v710_v32, %v479_v40  ;;  %v706_v32 = vld [vmem:[%s918_s8] ss:$0 sm:$0xff] }
 0x172   : > { %v488_v44 = vsel %vm485_vm9, %v487_v41, %v483_v43 }
 0x173   : > { %v489_v45 = vmul.f32 %v488_v44, %v464_v42 }
 0x175   : > { %v689_v46 = vclamps-f32 %v489_v45, 1.0 }
 0x177   : > { %v492_v48 = vadd.f32 1.0, %v689_v46 }
 0x179   : > { %v493_v49 = vmul.f32 %v492_v48, %v450_v47 }
 0x17b   : > { %690 = vmatmul.msk.f32.vlgmr.msra.gmra.mxu2 %vm506_vm10, %v493_v49 }
 0x1fe   : > { %v527_v51 = vpop.f32.mrf.mxu2 }
 0x1ff   : > { %v528_v52 = vadd.f32 %v705_v50, %v527_v51 }
 0x201   : > { %v531_v53 = vmul.f32 0.70710677, %v528_v52  ;;  %v530_v29 = vmul.f32 0.5, %v528_v52 }
 0x203   : > { %v532_v54 = vmul.f32 %v531_v53, %v531_v53 }
 0x205   : > { %v533_v55 = vmin.f32 %v532_v54, 16.0 }
 0x207   : > { %v534_v56 = vmul.f32 2.1237322e-06, %v533_v55  ;;  %v545_v57 = vmul.f32 3.8918573e-05, %v533_v55 }
 0x209   : > { %v535_v58 = vadd.f32 0.00028619796, %v534_v56  ;;  %v546_v59 = vadd.f32 0.001143296, %v545_v57 }
 0x20b   : > { %v536_v60 = vmul.f32 %v535_v58, %v533_v55  ;;  %v547_v61 = vmul.f32 %v546_v59, %v533_v55 }
 0x20d   : > { %v548_v0 = vadd.f32 0.014752088, %v547_v61  ;;  %v537_v1 = vadd.f32 0.0036580483, %v536_v60 }
 0x20f   : > { %v549_v3 = vmul.f32 %v548_v0, %v533_v55  ;;  %v538_v6 = vmul.f32 %v537_v1, %v533_v55 }
 0x211   : > { %v550_v5 = vadd.f32 0.112945676, %v549_v3  ;;  %v539_v9 = vadd.f32 0.05243302, %v538_v6 }
 0x213   : > { %v551_v7 = vmul.f32 %v550_v5, %v533_v55  ;;  %v540_v12 = vmul.f32 %v539_v9, %v533_v55 }
 0x215   : > { %v552_v8 = vadd.f32 0.4994258, %v551_v7  ;;  %v541_v13 = vadd.f32 0.18741608, %v540_v12 }
 0x217   : > { %v553_v10 = vmul.f32 %v552_v8, %v533_v55  ;;  %v542_v15 = vmul.f32 %v541_v13, %v533_v55 }
 0x219   : > { %v554_v11 = vadd.f32 1.0, %v553_v10  ;;  %v543_v19 = vadd.f32 1.1283791, %v542_v15 }
 0x21b   : > { %711 = vrcp.f32 %v554_v11  ;;  %v566_v18 = vand.u32 2147483648, %v554_v11  ;;  %v564_v21 = vand.u32 2147483647, %v554_v11  ;;  %vm560_vm12 = vweird.f32 %v554_v11 }
 0x21c   : > { %v544_v24 = vmul.f32 %v543_v19, %v531_v53 }
 0x21d   : > { %v567_v23 = vor.u32 1.1754944e-38, %v566_v18  ;;  %vm565_vm14 = vcmp.eq.f32.partialorder %v564_v21, 8.507059e+37 }
 0x221   : > { %v712_v14 = vpop.eup %711 }
 0x222   : > { %v556_v16 = vmul.f32 %v712_v14, %v554_v11  ;;  %vm561_vm11 = vweird.f32 %v712_v14 }
 0x223   : > { %vm562_vm13 = vmor %vm560_vm12, %vm561_vm11 }
 0x224   : > { %v557_v17 = vsub.f32 1.0, %v556_v16 }
 0x226   : > { %v558_v20 = vmul.f32 %v712_v14, %v557_v17 }
 0x228   : > { %v559_v22 = vadd.f32 %v712_v14, %v558_v20 }
 0x22a   : > { %v563_v25 = vsel %vm562_vm13, %v712_v14, %v559_v22 }
 0x22b   : > { %v568_v26 = vsel %vm565_vm14, %v567_v23, %v563_v25 }
 0x22c   : > { %v569_v27 = vmul.f32 %v568_v26, %v544_v24 }
 0x22e   : > { %v691_v28 = vclamps-f32 %v569_v27, 1.0 }
 0x230   : > { %v572_v30 = vadd.f32 1.0, %v691_v28 }
 0x232   : > { %v573_v31 = vmul.f32 %v572_v30, %v530_v29 }
 0x234   : > { %692 = vmatmul.msk.f32.vlgmr.msra.gmra.mxu3 %vm582_vm15, %v573_v31 }
 0x2b7   : > { %v603_v33 = vpop.f32.mrf.mxu3 }
 0x2b8   : > { %v604_v34 = vadd.f32 %v706_v32, %v603_v33 }
 0x2ba   : > { %v606_v35 = vmul.f32 1.442695, %v604_v34 }
 0x2bc   : > { %713 = vpow2.f32 %v606_v35 }
 0x2c2   : > { %v714_v36 = vpop.eup %713 }
 0x2c3   : > { %v608_v37 = vadd.f32 1.0, %v714_v36 }
 0x2c5   : > { %715 = vrcp.f32 %v608_v37  ;;  %v620_v41 = vand.u32 2147483648, %v608_v37  ;;  %v618_v43 = vand.u32 2147483647, %v608_v37  ;;  %vm614_vm1 = vweird.f32 %v608_v37 }
 0x2c7   : > { %v621_v45 = vor.u32 1.1754944e-38, %v620_v41  ;;  %vm619_vm4 = vcmp.eq.f32.partialorder %v618_v43, 8.507059e+37 }
 0x2cb   : > { %v716_v38 = vpop.eup %715 }
 0x2cc   : > { %v610_v39 = vmul.f32 %v716_v38, %v608_v37  ;;  %vm615_vm0 = vweird.f32 %v716_v38 }
 0x2cd   : > { %vm616_vm2 = vmor %vm614_vm1, %vm615_vm0 }
 0x2ce   : > { %v611_v40 = vsub.f32 1.0, %v610_v39 }
 0x2d0   : > { %v612_v42 = vmul.f32 %v716_v38, %v611_v40 }
 0x2d2   : > { %v613_v44 = vadd.f32 %v716_v38, %v612_v42 }
 0x2d4   : > { %v617_v46 = vsel %vm616_vm2, %v716_v38, %v613_v44 }
 0x2d5   : > { %v622_v47 = vsel %vm619_vm4, %v621_v45, %v617_v46 }
 0x2d6   : > { %625 = vst.msk [vmem:[%s327_s18] sm:$0xff] %vm624_vm3, %v622_v47 }
 0x2d7 PF: > { %s19_s30 = sadd.s32 1, %s723_s30  }
 0x2d8   : > { %p16_p4 = scmp.ge.s32.totalorder %s19_s30, 5  }
 0x2da   :  { %18 = sbr.rel (!%p16_p4) target bundleno = 1 (0x1), region = 86 }

</bundles_post_ra>
